<compile_context>
chip_gen: v7x
topology: tpu7x:2x2x1
jax: 0.10.0
libtpu: 0.0.40
codegen_flags: <defaults>
</compile_context>

<pallas_src>
import jax
import jax.numpy as jnp
from jax import lax
from jax.experimental import pallas as pl
from jax.experimental.pallas import tpu as pltpu

GAMMA = 2          # statically 2 -> focal weight lowered to (1-p)*(1-p)
EPS = 1e-07        # unused in the reference forward (kept for parity with __init__)

_LANE = 128
_SUBLANE = 8
_NUM_CORE_SPLITS = 2                    # v7x: 2 TensorCores/chip; harmless on v5e/v6e


def _vmem_budget():
    """(per-pipeline-buffer byte budget, scoped vmem_limit_bytes) per TPU generation."""
    try:
        cap = pltpu.get_tpu_info().vmem_capacity_bytes
    except Exception:
        cap = 64 * 1024 * 1024          # unknown part -> conservative (v7x-safe)
    if cap >= 100 * 1024 * 1024:        # v5e / v6e: 128 MiB physical VMEM
        return 16 * 1024 * 1024, 96 * 1024 * 1024
    return 8 * 1024 * 1024, 48 * 1024 * 1024   # v7x: 64 MiB per TensorCore


def _pick_block_n(n, c, itemsize, budget_bytes):
    """Largest dtype-aligned row tile whose VMEM footprint fits the per-buffer budget.

    No artificial row cap (mem-bound streaming reduction: bigger tiles = fewer
    grid steps).  Footprint counts the logits slab (C lane-padded to 128) PLUS
    the lane-padded (block_n, 1) int32 target column that rides along.
    """
    mult = _SUBLANE * max(1, 4 // itemsize)        # 8 (f32) / 16 (bf16) / 32 (int8/fp8)
    c_pad = ((c + _LANE - 1) // _LANE) * _LANE
    per_row = c_pad * itemsize + _LANE * 4         # logits row + padded target row
    rows = max(mult, (budget_bytes // per_row) // mult * mult)
    if n <= rows and n % mult != 0:
        return n            # single block == full array dim (always a legal block shape)
    return int(min(rows, n))   # multiple of `mult` (or == n); tail rows masked in-kernel


def focal_loss(logits, target, *, tile_budget_bytes=None, vmem_limit_bytes=None):
    """logits: (N, C) float (any dtype, streamed as-is); target: (N,) int class ids.

    Returns the scalar focal loss (f32), matching the PyTorch reference forward.
    """
    n, c = logits.shape
    itemsize = jnp.dtype(logits.dtype).itemsize
    auto_budget, auto_limit = _vmem_budget()
    budget = auto_budget if tile_budget_bytes is None else tile_budget_bytes
    vmem_limit = auto_limit if vmem_limit_bytes is None else vmem_limit_bytes

    block_n = _pick_block_n(n, c, itemsize, budget)
    num_tiles = pl.cdiv(n, block_n)
    core_splits = max(1, min(_NUM_CORE_SPLITS, num_tiles))
    tiles_per_core = pl.cdiv(num_tiles, core_splits)

    target2d = target.astype(jnp.int32).reshape(n, 1)

    def in_index_map(ci, ti):
        # Clamp so padded (core, tile) slots re-read a valid block; their rows are
        # zeroed in-kernel via the *logical* (unclamped) row index.
        return (jnp.minimum(ci * tiles_per_core + ti, num_tiles - 1), 0)

    def kernel(logits_ref, target_ref, out_ref, acc_ref):
        ci = pl.program_id(0)          # core-split axis ("parallel")
        ti = pl.program_id(1)          # N-tile reduction axis ("arbitrary")

        @pl.when(ti == 0)
        def _init():
            acc_ref[...] = jnp.zeros_like(acc_ref)

        x = logits_ref[...].astype(jnp.float32)      # (block_n, C), upcast in-kernel
        tgt = target_ref[...]                        # (block_n, 1) int32

        # Row-wise log-sum-exp (max-subtracted for stability).
        m = jnp.max(x, axis=-1, keepdims=True)                                  # (block_n, 1)
        lse = m + jnp.log(jnp.sum(jnp.exp(x - m), axis=-1, keepdims=True))      # (block_n, 1)

        # Target-logit gather: NO validity masking on the (block_n, C) select
        # (saves ~2 full-size VALU ops per tile); validity is applied on the
        # (block_n, 1) column below.
        col = lax.broadcasted_iota(jnp.int32, x.shape, 1)                        # (block_n, C)
        tgt_logit = jnp.sum(jnp.where(col == tgt, x, 0.0), axis=-1, keepdims=True)  # (block_n, 1)

        # Validity mask for tail rows / duplicated clamped tiles (logical index).
        logical_tile = ci * tiles_per_core + ti
        row = lax.broadcasted_iota(jnp.int32, (block_n, 1), 0) + logical_tile * block_n
        valid = row < n                                                          # (block_n, 1)

        # NOTE: keep this a where-SELECT (never multiply-by-mask): padded tail rows
        # hold stale VMEM bits that may be NaN/Inf and must not propagate.
        acc_ref[...] += jnp.sum(jnp.where(valid, lse - tgt_logit, 0.0), keepdims=True)

        @pl.when(ti == pl.num_programs(1) - 1)
        def _finalize():
            out_ref[...] = jnp.broadcast_to(acc_ref[...], out_ref.shape)

    cost = pl.CostEstimate(
        flops=int(5 * n * c),
        transcendentals=int(n * c),
        bytes_accessed=int(n * c * itemsize + n * 4 + core_splits * _SUBLANE * _LANE * 4),
    )

    partials_buf = pl.pallas_call(
        kernel,
        out_shape=jax.ShapeDtypeStruct((core_splits * _SUBLANE, _LANE), jnp.float32),
        grid_spec=pltpu.PrefetchScalarGridSpec(
            num_scalar_prefetch=0,
            grid=(core_splits, tiles_per_core),
            in_specs=[
                pl.BlockSpec((block_n, c), in_index_map),
                pl.BlockSpec((block_n, 1), in_index_map),
            ],
            out_specs=pl.BlockSpec((_SUBLANE, _LANE), lambda ci, ti: (ci, 0)),
            scratch_shapes=[pltpu.VMEM((1, 1), jnp.float32)],
        ),
        compiler_params=pltpu.CompilerParams(
            dimension_semantics=("parallel", "arbitrary"),
            vmem_limit_bytes=vmem_limit,
        ),
        cost_estimate=cost,
    )(logits, target2d)

    # Tiny scalar finalize in JAX: mean over the true N, then the focal transform.
    total_nll = jnp.sum(partials_buf[::_SUBLANE, 0])     # per-core partial sums
    logp = total_nll / jnp.float32(n)                    # == nn.CrossEntropyLoss() mean
    p = jnp.exp(-logp)
    one_minus_p = 1.0 - p
    return one_minus_p * one_minus_p * logp              # (1 - p) ** GAMMA * logp, GAMMA == 2


def _reference(logits, target):
    x = logits.astype(jnp.float32)
    n = x.shape[0]
    lse = jax.scipy.special.logsumexp(x, axis=-1)
    nll = lse - x[jnp.arange(n), target]
    logp = jnp.mean(nll)
    p = jnp.exp(-logp)
    return (1.0 - p) ** 2 * logp


if __name__ == "__main__":
    root = jax.random.PRNGKey(0)
    k1, k2, k3, k4, k5, k6 = jax.random.split(root, 6)

    # Check 1: small f32 case (single tile), plus the native-bf16 streaming path.
    N, C = 8, 32
    logits = jax.random.normal(k1, (N, C), dtype=jnp.float32)
    target = jax.random.randint(k2, (N,), 0, C, dtype=jnp.int32)

    loss = focal_loss(logits, target)
    jax.block_until_ready(loss)
    ref = _reference(logits, target)
    assert jnp.allclose(loss, ref, rtol=1e-5, atol=1e-6), (loss, ref)

    logits_bf16 = logits.astype(jnp.bfloat16)            # streamed as bf16, upcast in-kernel
    loss_bf = focal_loss(logits_bf16, target)
    jax.block_until_ready(loss_bf)
    ref_bf = _reference(logits_bf16, target)
    assert jnp.allclose(loss_bf, ref_bf, rtol=1e-4, atol=1e-5), (loss_bf, ref_bf)

    # Check 2: force tiny tiles -> multi-tile grid, core split, tile clamping and
    # tail-row masking (N = 37 is not a multiple of the 8-row tile).
    N2, C2 = 37, 32
    logits2 = jax.random.normal(k3, (N2, C2), dtype=jnp.float32)
    target2 = jax.random.randint(k4, (N2,), 0, C2, dtype=jnp.int32)

    loss2 = focal_loss(logits2, target2, tile_budget_bytes=1)   # -> block_n == 8, 5 tiles
    jax.block_until_ready(loss2)
    ref2 = _reference(logits2, target2)
    assert jnp.allclose(loss2, ref2, rtol=1e-5, atol=1e-6), (loss2, ref2)

    # Check 3: C > 128 with a lane tail (C = 160) and a mid-size tile budget so the
    # grid has multiple tiles per core plus one clamped duplicate slot.
    N3, C3 = 300, 160
    logits3 = jax.random.normal(k5, (N3, C3), dtype=jnp.float32)
    target3 = jax.random.randint(k6, (N3,), 0, C3, dtype=jnp.int32)

    loss3 = focal_loss(logits3, target3, tile_budget_bytes=200 * 1024)
    jax.block_until_ready(loss3)
    ref3 = _reference(logits3, target3)
    assert jnp.allclose(loss3, ref3, rtol=1e-5, atol=1e-6), (loss3, ref3)

    print("KERNEL_OK")
</pallas_src>

<mosaic_0001>
module attributes {stable_mosaic.version = 11 : i64} {
  func.func @kernel(%arg0: i32, %arg1: i32, %arg2: memref<8x32xf32, #tpu.memory_space<vmem>>, %arg3: memref<8x1xi32, #tpu.memory_space<vmem>>, %arg4: memref<8x128xf32, #tpu.memory_space<vmem>>, %arg5: memref<1x1xf32, #tpu.memory_space<vmem>>) attributes {dimension_semantics = [#tpu.dimension_semantics<parallel>, #tpu.dimension_semantics<arbitrary>], iteration_bounds = array<i64: 1, 1>, scalar_prefetch = 0 : i64, scratch_operands = 1 : i64, tpu.core_type = #tpu.core_type<tc>, window_params = [{transform_indices = @transform_0, window_bounds = array<i64: 8, 32>}, {transform_indices = @transform_1, window_bounds = array<i64: 8, 1>}, {transform_indices = @transform_2, window_bounds = array<i64: 8, 128>}]} {
    %c0_i32 = arith.constant 0 : i32
    %0 = arith.cmpi eq, %arg1, %c0_i32 : i32
    %1 = arith.extui %0 : i1 to i32
    %c0_i32_0 = arith.constant 0 : i32
    %2 = arith.cmpi ne, %1, %c0_i32_0 : i32
    scf.if %2 {
      %cst_16 = arith.constant 0.000000e+00 : f32
      %43 = vector.broadcast %cst_16 : f32 to vector<1x1xf32>
      %c0_17 = arith.constant 0 : index
      %c0_18 = arith.constant 0 : index
      %44 = vector.load %arg5[%c0_17, %c0_18] : memref<1x1xf32, #tpu.memory_space<vmem>>, vector<1x1xf32>
      tpu.vector_store %arg5[%c0_17, %c0_18], %43 {strides = array<i32>} : memref<1x1xf32, #tpu.memory_space<vmem>>, vector<1x1xf32>,
    } else {
    }
    %c0 = arith.constant 0 : index
    %c0_1 = arith.constant 0 : index
    %3 = vector.load %arg2[%c0, %c0_1] : memref<8x32xf32, #tpu.memory_space<vmem>>, vector<8x32xf32>
    %c0_2 = arith.constant 0 : index
    %c0_3 = arith.constant 0 : index
    %4 = vector.load %arg3[%c0_2, %c0_3] : memref<8x1xi32, #tpu.memory_space<vmem>>, vector<8x1xi32>
    %cst = arith.constant dense<0xFF800000> : vector<8xf32>
    %5 = vector.multi_reduction <maximumf>, %3, %cst [1] : vector<8x32xf32> to vector<8xf32>
    %6 = vector.shape_cast %5 : vector<8xf32> to vector<8x1xf32>
    %7 = vector.broadcast %6 : vector<8x1xf32> to vector<8x32xf32>
    %8 = arith.subf %3, %7 : vector<8x32xf32>
    %9 = math.exp %8 : vector<8x32xf32>
    %cst_4 = arith.constant dense<0.000000e+00> : vector<8xf32>
    %10 = vector.multi_reduction <add>, %9, %cst_4 [1] : vector<8x32xf32> to vector<8xf32>
    %11 = vector.shape_cast %10 : vector<8xf32> to vector<8x1xf32>
    %12 = math.log %11 : vector<8x1xf32>
    %13 = arith.addf %6, %12 : vector<8x1xf32>
    %14 = tpu.iota {dimensions = array<i32: 1>} : vector<8x32xi32>
    %15 = vector.broadcast %4 : vector<8x1xi32> to vector<8x32xi32>
    %16 = arith.cmpi eq, %14, %15 : vector<8x32xi32>
    %cst_5 = arith.constant 0.000000e+00 : f32
    %17 = vector.broadcast %cst_5 : f32 to vector<8x32xf32>
    %18 = arith.select %16, %3, %17 : vector<8x32xi1>, vector<8x32xf32>
    %cst_6 = arith.constant dense<0.000000e+00> : vector<8xf32>
    %19 = vector.multi_reduction <add>, %18, %cst_6 [1] : vector<8x32xf32> to vector<8xf32>
    %20 = vector.shape_cast %19 : vector<8xf32> to vector<8x1xf32>
    %c1_i32 = arith.constant 1 : i32
    %21 = arith.muli %arg0, %c1_i32 : i32
    %22 = arith.addi %21, %arg1 : i32
    %23 = tpu.iota {dimensions = array<i32: 0>} : vector<8x1xi32>
    %c8_i32 = arith.constant 8 : i32
    %24 = arith.muli %22, %c8_i32 : i32
    %25 = vector.broadcast %24 : i32 to vector<8x1xi32>
    %26 = arith.addi %23, %25 : vector<8x1xi32>
    %c8_i32_7 = arith.constant 8 : i32
    %27 = vector.broadcast %c8_i32_7 : i32 to vector<8x1xi32>
    %28 = arith.cmpi slt, %26, %27 : vector<8x1xi32>
    %c0_8 = arith.constant 0 : index
    %c0_9 = arith.constant 0 : index
    %29 = vector.load %arg5[%c0_8, %c0_9] : memref<1x1xf32, #tpu.memory_space<vmem>>, vector<1x1xf32>
    %30 = arith.subf %13, %20 : vector<8x1xf32>
    %cst_10 = arith.constant 0.000000e+00 : f32
    %31 = vector.broadcast %cst_10 : f32 to vector<8x1xf32>
    %32 = arith.select %28, %30, %31 : vector<8x1xi1>, vector<8x1xf32>
    %33 = vector.shape_cast %32 : vector<8x1xf32> to vector<1x8x1xf32>
    %cst_11 = arith.constant dense<0.000000e+00> : vector<1xf32>
    %34 = vector.multi_reduction <add>, %33, %cst_11 [1, 2] : vector<1x8x1xf32> to vector<1xf32>
    %35 = vector.shape_cast %34 : vector<1xf32> to vector<1x1x1xf32>
    %36 = vector.extract %35[0, 0, 0] : f32 from vector<1x1x1xf32>
    %37 = vector.broadcast %36 : f32 to vector<1x1xf32>
    %38 = arith.addf %29, %37 : vector<1x1xf32>
    %c0_12 = arith.constant 0 : index
    %c0_13 = arith.constant 0 : index
    %39 = vector.load %arg5[%c0_12, %c0_13] : memref<1x1xf32, #tpu.memory_space<vmem>>, vector<1x1xf32>
    tpu.vector_store %arg5[%c0_12, %c0_13], %38 {strides = array<i32>} : memref<1x1xf32, #tpu.memory_space<vmem>>, vector<1x1xf32>,
    %c0_i32_14 = arith.constant 0 : i32
    %40 = arith.cmpi eq, %arg1, %c0_i32_14 : i32
    %41 = arith.extui %40 : i1 to i32
    %c0_i32_15 = arith.constant 0 : i32
    %42 = arith.cmpi ne, %41, %c0_i32_15 : i32
    scf.if %42 {
      %c0_16 = arith.constant 0 : index
      %c0_17 = arith.constant 0 : index
      %43 = vector.load %arg5[%c0_16, %c0_17] : memref<1x1xf32, #tpu.memory_space<vmem>>, vector<1x1xf32>
      %44 = vector.shape_cast %43 : vector<1x1xf32> to vector<1x1xf32>
      %45 = vector.broadcast %44 : vector<1x1xf32> to vector<8x128xf32>
      %c0_18 = arith.constant 0 : index
      %c0_19 = arith.constant 0 : index
      %46 = vector.load %arg4[%c0_18, %c0_19] : memref<8x128xf32, #tpu.memory_space<vmem>>, vector<8x128xf32>
      tpu.vector_store %arg4[%c0_18, %c0_19], %45 {strides = array<i32>} : memref<8x128xf32, #tpu.memory_space<vmem>>, vector<8x128xf32>,
    } else {
    }
    return
  }
  func.func @transform_0(%arg0: i32, %arg1: i32) -> (i32, i32) {
    %c1_i32 = arith.constant 1 : i32
    %0 = arith.muli %arg0, %c1_i32 : i32
    %1 = arith.addi %0, %arg1 : i32
    %c0_i32 = arith.constant 0 : i32
    %2 = arith.minsi %1, %c0_i32 : i32
    %c0_i32_0 = arith.constant 0 : i32
    %c0_i32_1 = arith.constant 0 : i32
    return %2, %c0_i32_0 : i32, i32
  }
  func.func @transform_1(%arg0: i32, %arg1: i32) -> (i32, i32) {
    %c1_i32 = arith.constant 1 : i32
    %0 = arith.muli %arg0, %c1_i32 : i32
    %1 = arith.addi %0, %arg1 : i32
    %c0_i32 = arith.constant 0 : i32
    %2 = arith.minsi %1, %c0_i32 : i32
    %c0_i32_0 = arith.constant 0 : i32
    %c0_i32_1 = arith.constant 0 : i32
    return %2, %c0_i32_0 : i32, i32
  }
  func.func @transform_2(%arg0: i32, %arg1: i32) -> (i32, i32) {
    %c0_i32 = arith.constant 0 : i32
    %c0_i32_0 = arith.constant 0 : i32
    return %arg0, %c0_i32 : i32, i32
  }
}

</mosaic_0001>

<bundles_post_ra>
// kernel: tpu_custom_call.1
= control target key start
LH: loop header
LB: loop body
LE: loop exit
PB: predicated region body
PF: predicated region fallthrough
CT: control target
= control target key end

     0   :  { %vm74_vm0 = vcmask 261120   ;;  %s237_s0 = inlined_call_operand.vmem [shape: f32[8,32], index: 0, kind: input, shape index: {}]   ;;  %s238_s1 = inlined_call_operand.vmem [shape: s32[8,1], index: 1, kind: input, shape index: {}]   ;;  %s239_s2 = inlined_call_operand.hbm [shape: f32[8,128], index: 2, kind: output, shape index: {}]  }
   0x1   :  { %v72_v0 = vld [vmem:[%s237_s0] sm:$0xff] }
   0x2   :  { %7 = vsyncpa [#allocation4], 0  ;;  %v75_v1 = vsel %vm74_vm0, %v72_v0, -inf  ;;  %v198_v2 = vmov 0   ;;  %v73_v3 = vld [vmem:[%s238_s1] sm:$0xff]  ;;  %v87_v7 = vlaneseq  ;;  %vm107_vm2 = vcmask 7168  }
   0x3   :  { %168 = vset.pattern.permute.xlu0 %v198_v2  ;;  %169 = vset.pattern.permute.xlu1 %v198_v2  ;;  %vm70_vm3 = vcmask 0   ;;  %v199_v21 = vmov 0.0   ;;  %s200_s1 = smov [#allocation3]  }
   0x4   :  { %76 = vmax.xlane.f32.xlu0 %v75_v1  ;;  %v88_v8 = vand.u32 127, %v87_v7  ;;  %71 = vst.msk [vmem:[#allocation2] sm:$0x1] %vm70_vm3, %v199_v21  ;;  %s142_s13 = sshll.u32 %s200_s1, 4  ;;  %s143_s13 = int_to_ptr.vmem [resolvable:$true] %s142_s13 }
   0x5   :  { %s174_s14 = scalar_lea.vmem %s143_s13, 128  ;;  %p179_p1 = scmp.lt.s32.totalorder %s143_s13, %s143_s13 }
   0x6   :  { %p175_p0 = scmp.ne.s32.totalorder %s143_s13, %s174_s14  ;;  %p180_p2 = scmp.lt.s32.totalorder %s174_s14, %s174_s14 }
   0x8   :  { %p181_p3 = por %p180_p2, %p179_p1 }
   0xa   :  { %p182_p4 = pnand %p181_p3, %p175_p0 }
   0xb   :  { %v104_v29 = vld [vmem:[#allocation2] sm:$0x1] }
  0x1a   :  { %90 = vperm.xlu0 %168, %v73_v3  }
  0x91   :  { %v77_v4 = vpop.xlane.xlu0 %76 }
  0x92   :  { %v78_v5 = vsub.f32 %v72_v0, %v77_v4 }
  0x94   :  { %v79_v6 = vmul.f32 1.442695, %v78_v5 }
  0x96   :  { %170 = vpow2.f32 %v79_v6 }
  0x99   :  { %v91_v9 = vpop.permute.xlu0 %90 }
  0x9a   :  { %vm92_vm1 = vcmp.eq.s32.totalorder %v88_v8, %v91_v9 }
  0x9b   :  { %v93_v11 = vsel %vm92_vm1, %v72_v0, 0.0 }
  0x9c   :  { %v94_v13 = vsel %vm74_vm0, %v93_v11, 0.0 }
  0xa0   :  { %v171_v10 = vpop.eup %170 }
  0xa1   :  { %v81_v12 = vsel %vm74_vm0, %v171_v10, 0.0 }
  0xa2   :  { %82 = vadd.xlane.f32.xlu1 %v81_v12 }
  0xa6   :  { %95 = vadd.xlane.f32.xlu1 %v94_v13 }
 0x12f   :  { %v83_v14 = vpop.xlane.xlu1 %82 }
 0x130   :  { %172 = vlog2.f32 %v83_v14 }
 0x133   :  { %v96_v17 = vpop.xlane.xlu1 %95 }
 0x13a   :  { %v173_v15 = vpop.eup %172 }
 0x13b   :  { %v85_v16 = vmul.f32 0.6931472, %v173_v15 }
 0x13d   :  { %v86_v18 = vadd.f32 %v85_v16, %v77_v4 }
 0x13f   :  { %v105_v19 = vsub.f32 %v86_v18, %v96_v17 }
 0x141   :  { %v108_v20 = vsel %vm107_vm2, %v105_v19, 0.0 }
 0x142   :  { %109 = vadd.xlane.f32.xlu1 %v108_v20 }
 0x1cf   :  { %v110_v22 = vpop.xlane.xlu1 %109 }
 0x1d0   :  { %v111_v23 = vrot.slane %v110_v22, 4 }
 0x1d2   :  { %v112_v24 = vadd.f32 %v111_v23, %v110_v22 }
 0x1d4   :  { %v113_v25 = vrot.slane %v112_v24, 2 }
 0x1d6   :  { %v114_v26 = vadd.f32 %v113_v25, %v112_v24 }
 0x1d8   :  { %v115_v27 = vrot.slane %v114_v26, 1 }
 0x1da   :  { %v116_v28 = vadd.f32 %v115_v27, %v114_v26 }
 0x1dc   :  { %163 = vpush %v116_v28 }
 0x20d   :  { %s164_s0 = spop %163 }
 0x20e   :  { %v118_v30 = vstv %s164_s0 }
 0x20f   :  { %v119_v31 = vadd.f32 %v118_v30, %v104_v29 }
 0x211   :  { %121 = vst.msk [vmem:[#allocation2] sm:$0x1] %vm70_vm3, %v119_v31 }
 0x218   :  { %v162_v32 = vld [vmem:[#allocation2] ss:$0 sm:$0xff] }
 0x219   :  { %132 = vperm.xlu1 %169, %v162_v32  }
 0x298   :  { %v133_v33 = vpop.permute.xlu1 %132 }
 0x299   :  { %135 = vst [vmem:[#allocation3] sm:$0xff] %v133_v33 }
 0x29a   :  { %185 = shalt.err (!%p182_p4)
}
 0x29b   :  { %s186_s17 = scalar_lea.hbm %s239_s2, 128 }
 0x29c   :  { %p187_p5 = scmp.ne.s32.totalorder %s239_s2, %s186_s17  ;;  %p190_p6 = scmp.lt.u32.totalorder %s186_s17, %s239_s2 }
 0x29e   :  { %p192_p7 = pnand %p190_p6, %p187_p5 }
 0x2a0   :  { %195 = shalt.err (!%p192_p7)
}
 0x2a1   :  { %145 = dma.vmem_to_hbm [thread:$0]  %s143_s13, 128, %s239_s2, [#allocation4]  }
 0x2a2   :  { %196 = dma.done.wait [#allocation4], 128  }
 0x2a3   :  { %197 = vsyncadd [#allocation4], 4294967168 }
 0x2a4   :  { %149 = vsyncpa [#allocation4], 1 }

</bundles_post_ra>
